<compile_context>
chip_gen: v7x
topology: tpu7x:2x2x1
jax: 0.10.0
libtpu: 0.0.40
codegen_flags: <defaults>
</compile_context>

<pallas_src>
import functools

import jax
import jax.numpy as jnp
from jax.experimental import pallas as pl
from jax.experimental.pallas import tpu as pltpu

_LANE = 128     # vreg lane width
_SUBLANE = 8    # vreg sublane count


def _round_up(n, m):
    return ((n + m - 1) // m) * m


def _cdiv(a, b):
    return (a + b - 1) // b


# -----------------------------------------------------------------------------
# Kernels
# -----------------------------------------------------------------------------
def _residual_core(x, x_res, w0_ref, b0_ref, w1_ref, b1_ref, o_ref):
    """x: (TB, Fp) f32 full-feature tile; x_res: (TB, TN) f32 residual tile."""
    # lin_0: bf16 MXU feed, f32 accumulate, f32 bias + ReLU.
    h = jnp.dot(x.astype(jnp.bfloat16), w0_ref[...],
                preferred_element_type=jnp.float32) + b0_ref[...]
    h = jnp.maximum(h, 0.0)
    # lin_1 (possibly only an output-feature tile of it).
    y = jnp.dot(h.astype(jnp.bfloat16), w1_ref[...],
                preferred_element_type=jnp.float32) + b1_ref[...]
    # residual add + ReLU, f32, lane-dense store.
    o_ref[...] = jnp.maximum(y + x_res, 0.0).astype(o_ref.dtype)


def _residual_kernel(x_ref, w0_ref, b0_ref, w1_ref, b1_ref, o_ref):
    x = x_ref[...]
    _residual_core(x, x, w0_ref, b0_ref, w1_ref, b1_ref, o_ref)


def _residual_kernel_nsplit(x_ref, xres_ref, w0_ref, b0_ref, w1_ref, b1_ref,
                            o_ref):
    _residual_core(x_ref[...], xres_ref[...], w0_ref, b0_ref, w1_ref, b1_ref,
                   o_ref)


# -----------------------------------------------------------------------------
# One-time parameter preparation (call once at model init, NOT per forward)
# -----------------------------------------------------------------------------
def prepare_params(w0, b0, w1, b1):
    """PyTorch-layout (out, in) f32 params -> padded (in, out) bf16 weights +
    padded f32 (1, Fp) biases, done once."""
    F = w0.shape[0]
    Fp = _round_up(F, _LANE)
    pad = Fp - F
    w0_t = jnp.pad(w0.T, ((0, pad), (0, pad))).astype(jnp.bfloat16)
    w1_t = jnp.pad(w1.T, ((0, pad), (0, pad))).astype(jnp.bfloat16)
    b0_p = jnp.pad(b0, (0, pad)).astype(jnp.float32).reshape(1, Fp)
    b1_p = jnp.pad(b1, (0, pad)).astype(jnp.float32).reshape(1, Fp)
    return w0_t, b0_p, w1_t, b1_p


# -----------------------------------------------------------------------------
# Forward pass
# -----------------------------------------------------------------------------
@functools.partial(jax.jit, static_argnames=("block_b", "block_n"))
def residual_layer(x, w0_t, b0_p, w1_t, b1_p, *, block_b=512, block_n=None):
    """Forward of ResidualLayer.

    x:            (B, F) f32 activations (unpadded, original feature count F).
    w0_t, w1_t:   (Fp, Fp) bf16 weights from prepare_params (in, out layout).
    b0_p, b1_p:   (1, Fp) f32 padded biases from prepare_params.
    block_b:      target batch tile (padding-aware; TB chosen so Bp ~= B).
    block_n:      optional output-feature tile of lin_1 (multiple of 128) to
                  give the second v7x TensorCore work when batch grid is tiny.
    Returns (B, F) f32.
    """
    B, F = x.shape
    Fp = w0_t.shape[0]

    # Padding-aware batch tile: split B into as few ~block_b tiles as possible.
    n_bt = max(1, _cdiv(B, block_b))
    TB = _round_up(_cdiv(B, n_bt), _SUBLANE)
    Bp = _round_up(B, TB)
    num_b = Bp // TB

    # Optional output-feature tiling of lin_1 (v7x small-batch case).
    if block_n is None:
        TN = Fp
    else:
        TN = min(_round_up(block_n, _LANE), Fp)
        if Fp % TN != 0:
            TN = Fp
    num_n = Fp // TN

    x_p = jnp.pad(x, ((0, Bp - B), (0, Fp - F)))

    # VMEM budget: single-buffered weights/biases + double-buffered x/out tiles.
    # TODO(synk): for Fp > ~2048 (bf16) the resident-weight scheme exceeds
    # v7x's 64 MiB/TC; switch to a K/N-tiled two-matmul variant there.
    weight_bytes = (Fp * Fp + Fp * TN) * 2 + (Fp + TN) * 4
    act_bytes = 2 * TB * Fp * 4 + 2 * TB * TN * 4
    if num_n > 1:
        act_bytes += 2 * TB * TN * 4  # extra residual-x tile
    vmem_limit = min(max(int((weight_bytes + act_bytes) * 1.25) + (1 << 20),
                         32 << 20), 64 << 20)

    cost = pl.CostEstimate(
        flops=4 * Bp * Fp * Fp,                       # two Bp x Fp x Fp matmuls
        transcendentals=0,
        bytes_accessed=Bp * Fp * 4 * 2 + 2 * Fp * Fp * 2 + 2 * Fp * 4)

    if num_n == 1:
        grid = (num_b,)
        kernel = _residual_kernel
        in_specs = [
            pl.BlockSpec((TB, Fp), lambda i: (i, 0)),                  # x
            pl.BlockSpec((Fp, Fp), lambda i: (0, 0),
                         pipeline_mode=pl.Buffered(1)),                # w0
            pl.BlockSpec((1, Fp), lambda i: (0, 0),
                         pipeline_mode=pl.Buffered(1)),                # b0
            pl.BlockSpec((Fp, Fp), lambda i: (0, 0),
                         pipeline_mode=pl.Buffered(1)),                # w1
            pl.BlockSpec((1, Fp), lambda i: (0, 0),
                         pipeline_mode=pl.Buffered(1)),                # b1
        ]
        out_specs = pl.BlockSpec((TB, Fp), lambda i: (i, 0))
        operands = (x_p, w0_t, b0_p, w1_t, b1_p)
        dim_sem = ("parallel",)
    else:
        grid = (num_b, num_n)
        kernel = _residual_kernel_nsplit
        in_specs = [
            pl.BlockSpec((TB, Fp), lambda i, j: (i, 0)),               # x (full)
            pl.BlockSpec((TB, TN), lambda i, j: (i, j)),               # x (res)
            pl.BlockSpec((Fp, Fp), lambda i, j: (0, 0),
                         pipeline_mode=pl.Buffered(1)),                # w0
            pl.BlockSpec((1, Fp), lambda i, j: (0, 0),
                         pipeline_mode=pl.Buffered(1)),                # b0
            pl.BlockSpec((Fp, TN), lambda i, j: (0, j)),               # w1 tile
            pl.BlockSpec((1, TN), lambda i, j: (0, j)),                # b1 tile
        ]
        out_specs = pl.BlockSpec((TB, TN), lambda i, j: (i, j))
        operands = (x_p, x_p, w0_t, b0_p, w1_t, b1_p)
        dim_sem = ("parallel", "parallel")

    out = pl.pallas_call(
        kernel,
        out_shape=jax.ShapeDtypeStruct((Bp, Fp), x.dtype),
        grid=grid,
        in_specs=in_specs,
        out_specs=out_specs,
        compiler_params=pltpu.CompilerParams(
            dimension_semantics=dim_sem,
            vmem_limit_bytes=vmem_limit),
        cost_estimate=cost,
    )(*operands)

    return out[:B, :F]


def reference(x, w0, b0, w1, b1):
    y = jnp.maximum(x @ w0.T + b0, 0.0)
    y = y @ w1.T + b1
    return jnp.maximum(y + x, 0.0)


if __name__ == "__main__":
    key = jax.random.PRNGKey(0)

    def run_case(B, F, block_n=None):
        kx, k0, k1 = jax.random.split(jax.random.fold_in(key, F), 3)
        x = jax.random.normal(kx, (B, F), dtype=jnp.float32)
        # PyTorch-Linear-like uniform init; biases zero per the module's init.
        bound = 1.0 / (F ** 0.5)
        w0 = jax.random.uniform(k0, (F, F), jnp.float32, -bound, bound)
        w1 = jax.random.uniform(k1, (F, F), jnp.float32, -bound, bound)
        b0 = jnp.zeros((F,), jnp.float32)
        b1 = jnp.zeros((F,), jnp.float32)

        # One-time param prep (hoisted out of the per-call path).
        params = prepare_params(w0, b0, w1, b1)

        out = residual_layer(x, *params, block_n=block_n)
        out = jax.block_until_ready(out)

        ref = reference(x, w0, b0, w1, b1)
        assert out.shape == (B, F)
        # bf16 MXU feed -> relaxed tolerance vs the f32 reference.
        assert jnp.allclose(out, ref, atol=5e-2, rtol=5e-2), \
            f"mismatch vs reference (B={B}, F={F})"

    # Main small shape consistent with the module (batch=8, features=32).
    run_case(8, 32)
    # Exercise the optional feature-split path (v7x small-batch tiling).
    run_case(8, 256, block_n=128)

    print("KERNEL_OK")
</pallas_src>

<mosaic_0001>
module attributes {stable_mosaic.version = 11 : i64} {
  func.func @_residual_kernel(%arg0: i32, %arg1: memref<8x128xf32, #tpu.memory_space<vmem>>, %arg2: memref<128x128xbf16, #tpu.memory_space<vmem>>, %arg3: memref<1x128xf32, #tpu.memory_space<vmem>>, %arg4: memref<128x128xbf16, #tpu.memory_space<vmem>>, %arg5: memref<1x128xf32, #tpu.memory_space<vmem>>, %arg6: memref<8x128xf32, #tpu.memory_space<vmem>>) attributes {dimension_semantics = [#tpu.dimension_semantics<parallel>], iteration_bounds = array<i64: 1>, scalar_prefetch = 0 : i64, scratch_operands = 0 : i64, tpu.core_type = #tpu.core_type<tc>, window_params = [{transform_indices = @transform_0, window_bounds = array<i64: 8, 128>}, {pipeline_mode = #tpu.pipeline_mode<synchronous>, transform_indices = @transform_1, window_bounds = array<i64: 128, 128>}, {pipeline_mode = #tpu.pipeline_mode<synchronous>, transform_indices = @transform_2, window_bounds = array<i64: 1, 128>}, {pipeline_mode = #tpu.pipeline_mode<synchronous>, transform_indices = @transform_3, window_bounds = array<i64: 128, 128>}, {pipeline_mode = #tpu.pipeline_mode<synchronous>, transform_indices = @transform_4, window_bounds = array<i64: 1, 128>}, {transform_indices = @transform_5, window_bounds = array<i64: 8, 128>}]} {
    %c0 = arith.constant 0 : index
    %c0_0 = arith.constant 0 : index
    %0 = vector.load %arg1[%c0, %c0_0] : memref<8x128xf32, #tpu.memory_space<vmem>>, vector<8x128xf32>
    %1 = arith.truncf %0 : vector<8x128xf32> to vector<8x128xbf16>
    %c0_1 = arith.constant 0 : index
    %c0_2 = arith.constant 0 : index
    %2 = vector.load %arg2[%c0_1, %c0_2] : memref<128x128xbf16, #tpu.memory_space<vmem>>, vector<128x128xbf16>
    %cst = arith.constant dense<0.000000e+00> : vector<8x128xf32>
    %3 = tpu.matmul %1, %2, %cst {dimension_numbers = #tpu.dot_dimension_numbers<[1], [0], [0], [1], [0, 0, 1, 1], [], []>} : vector<8x128xbf16>, vector<128x128xbf16>, vector<8x128xf32> -> vector<8x128xf32>
    %c0_3 = arith.constant 0 : index
    %c0_4 = arith.constant 0 : index
    %4 = vector.load %arg3[%c0_3, %c0_4] : memref<1x128xf32, #tpu.memory_space<vmem>>, vector<1x128xf32>
    %5 = vector.broadcast %4 : vector<1x128xf32> to vector<8x128xf32>
    %6 = arith.addf %3, %5 : vector<8x128xf32>
    %cst_5 = arith.constant 0.000000e+00 : f32
    %7 = vector.broadcast %cst_5 : f32 to vector<8x128xf32>
    %8 = arith.maximumf %6, %7 : vector<8x128xf32>
    %9 = arith.truncf %8 : vector<8x128xf32> to vector<8x128xbf16>
    %c0_6 = arith.constant 0 : index
    %c0_7 = arith.constant 0 : index
    %10 = vector.load %arg4[%c0_6, %c0_7] : memref<128x128xbf16, #tpu.memory_space<vmem>>, vector<128x128xbf16>
    %cst_8 = arith.constant dense<0.000000e+00> : vector<8x128xf32>
    %11 = tpu.matmul %9, %10, %cst_8 {dimension_numbers = #tpu.dot_dimension_numbers<[1], [0], [0], [1], [0, 0, 1, 1], [], []>} : vector<8x128xbf16>, vector<128x128xbf16>, vector<8x128xf32> -> vector<8x128xf32>
    %c0_9 = arith.constant 0 : index
    %c0_10 = arith.constant 0 : index
    %12 = vector.load %arg5[%c0_9, %c0_10] : memref<1x128xf32, #tpu.memory_space<vmem>>, vector<1x128xf32>
    %13 = vector.broadcast %12 : vector<1x128xf32> to vector<8x128xf32>
    %14 = arith.addf %11, %13 : vector<8x128xf32>
    %15 = arith.addf %14, %0 : vector<8x128xf32>
    %cst_11 = arith.constant 0.000000e+00 : f32
    %16 = vector.broadcast %cst_11 : f32 to vector<8x128xf32>
    %17 = arith.maximumf %15, %16 : vector<8x128xf32>
    %c0_12 = arith.constant 0 : index
    %c0_13 = arith.constant 0 : index
    %18 = vector.load %arg6[%c0_12, %c0_13] : memref<8x128xf32, #tpu.memory_space<vmem>>, vector<8x128xf32>
    tpu.vector_store %arg6[%c0_12, %c0_13], %17 {strides = array<i32>} : memref<8x128xf32, #tpu.memory_space<vmem>>, vector<8x128xf32>,
    return
  }
  func.func @transform_0(%arg0: i32) -> (i32, i32) {
    %c0_i32 = arith.constant 0 : i32
    %c0_i32_0 = arith.constant 0 : i32
    return %arg0, %c0_i32 : i32, i32
  }
  func.func @transform_1(%arg0: i32) -> (i32, i32) {
    %c0_i32 = arith.constant 0 : i32
    %c0_i32_0 = arith.constant 0 : i32
    %c0_i32_1 = arith.constant 0 : i32
    return %c0_i32, %c0_i32_0 : i32, i32
  }
  func.func @transform_2(%arg0: i32) -> (i32, i32) {
    %c0_i32 = arith.constant 0 : i32
    %c0_i32_0 = arith.constant 0 : i32
    %c0_i32_1 = arith.constant 0 : i32
    return %c0_i32, %c0_i32_0 : i32, i32
  }
  func.func @transform_3(%arg0: i32) -> (i32, i32) {
    %c0_i32 = arith.constant 0 : i32
    %c0_i32_0 = arith.constant 0 : i32
    %c0_i32_1 = arith.constant 0 : i32
    return %c0_i32, %c0_i32_0 : i32, i32
  }
  func.func @transform_4(%arg0: i32) -> (i32, i32) {
    %c0_i32 = arith.constant 0 : i32
    %c0_i32_0 = arith.constant 0 : i32
    %c0_i32_1 = arith.constant 0 : i32
    return %c0_i32, %c0_i32_0 : i32, i32
  }
  func.func @transform_5(%arg0: i32) -> (i32, i32) {
    %c0_i32 = arith.constant 0 : i32
    %c0_i32_0 = arith.constant 0 : i32
    return %arg0, %c0_i32 : i32, i32
  }
}

</mosaic_0001>

<bundles_post_ra>
// kernel: residual_layer.1
= control target key start
LH: loop header
LB: loop body
LE: loop exit
PB: predicated region body
PF: predicated region fallthrough
CT: control target
= control target key end

     0   :  { %10 = vsyncpa [#allocation3], 0  ;;  %s548_s0 = inlined_call_operand.vmem [shape: f32[8,128], index: 0, kind: input, shape index: {}]   ;;  %s549_s1 = inlined_call_operand.hbm [shape: bf16[128,128], index: 1, kind: input, shape index: {}]   ;;  %s550_s2 = inlined_call_operand.vmem [shape: f32[1,128], index: 2, kind: input, shape index: {}]   ;;  %s551_s3 = inlined_call_operand.hbm [shape: bf16[128,128], index: 3, kind: input, shape index: {}]   ;;  %s552_s4 = inlined_call_operand.vmem [shape: f32[1,128], index: 4, kind: input, shape index: {}]   ;;  %s553_s5 = inlined_call_operand.hbm [shape: f32[8,128], index: 5, kind: output, shape index: {}]  }
   0x1   :  { %11 = vsyncpa [#allocation6], 0 }
   0x2   :  { %12 = vsyncpa [#allocation4], 0  ;;  %s466_s18 = smov [#allocation2]   ;;  %s394_s22 = scalar_lea.hbm %s549_s1, 1024 }
   0x3   :  { %s20_s19 = sshll.u32 %s466_s18, 4  ;;  %p395_p0 = scmp.ne.s32.totalorder %s549_s1, %s394_s22  ;;  %s21_s19 = int_to_ptr.vmem [resolvable:$true] %s20_s19 }
   0x4   :  { %p398_p1 = scmp.lt.u32.totalorder %s394_s22, %s549_s1 }
   0x6   :  { %p400_p2 = pnand %p398_p1, %p395_p0 }
   0x8   :  { %403 = shalt.err (!%p400_p2)
}
   0x9   :  { %s404_s27 = scalar_lea.vmem %s21_s19, 1024  ;;  %p409_p4 = scmp.lt.s32.totalorder %s21_s19, %s21_s19 }
   0xa   :  { %p405_p3 = scmp.ne.s32.totalorder %s21_s19, %s404_s27  ;;  %p410_p5 = scmp.lt.s32.totalorder %s404_s27, %s404_s27 }
   0xc   :  { %p411_p6 = por %p410_p5, %p409_p4 }
   0xe   :  { %p412_p7 = pnand %p411_p6, %p405_p3 }
  0x10   :  { %415 = shalt.err (!%p412_p7)
}
  0x11   :  { %s467_s28 = smov 64   ;;  %s468_s29 = smov 4  }
  0x12   :  { %26 = dma.hbm_to_vmem [thread:$0]  %s549_s1, 1024, %s21_s19, [#allocation3], %s467_s28, %s467_s28, %s468_s29  }
  0x13   :  { %s469_s7 = smov [#allocation5]   ;;  %s416_s11 = scalar_lea.hbm %s551_s3, 1024 }
  0x14   :  { %s34_s8 = sshll.u32 %s469_s7, 4  ;;  %p417_p8 = scmp.ne.s32.totalorder %s551_s3, %s416_s11  ;;  %s35_s8 = int_to_ptr.vmem [resolvable:$true] %s34_s8 }
  0x15   :  { %p420_p9 = scmp.lt.u32.totalorder %s416_s11, %s551_s3 }
  0x17   :  { %p422_p10 = pnand %p420_p9, %p417_p8 }
  0x19   :  { %425 = shalt.err (!%p422_p10)
}
  0x1a   :  { %s426_s16 = scalar_lea.vmem %s35_s8, 1024  ;;  %p431_p12 = scmp.lt.s32.totalorder %s35_s8, %s35_s8 }
  0x1b   :  { %p427_p11 = scmp.ne.s32.totalorder %s35_s8, %s426_s16  ;;  %p432_p13 = scmp.lt.s32.totalorder %s426_s16, %s426_s16 }
  0x1d   :  { %p433_p0 = por %p432_p13, %p431_p12 }
  0x1f   :  { %p434_p1 = pnand %p433_p0, %p427_p11 }
  0x21   :  { %437 = shalt.err (!%p434_p1)
}
  0x22   :  { %40 = dma.hbm_to_vmem [thread:$0]  %s551_s3, 1024, %s35_s8, [#allocation6], %s467_s28, %s467_s28, %s468_s29  }
  0x23   :  { %460 = dma.done.wait [#allocation3], 1024  }
  0x24   :  { %461 = vsyncadd [#allocation3], 4294966272 }
  0x25   :  { %462 = dma.done.wait [#allocation6], 1024  }
  0x26   :  { %463 = vsyncadd [#allocation6], 4294966272  ;;  %v470_v0 = vmov 0.0   ;;  %vm471_vm0 = vmmov 0   ;;  %v378_v1 = vld [vmem:[#allocation2] sm:$0xff]   ;;  %v379_v2 = vld [vmem:[#allocation2 + $0x8] sm:$0xff]  }
  0x27   :  { %331 = vmatprep.subr.bf16.mxu0 %v470_v0  ;;  %347 = vmatprep.mubr.msk.bf16.mxu0 %vm471_vm0, %v470_v0  ;;  %v380_v3 = vld [vmem:[#allocation2 + $0x10] sm:$0xff]   ;;  %v386_v4 = vld [vmem:[#allocation5] sm:$0xff]   ;;  %v381_v5 = vld [vmem:[#allocation2 + $0x18] sm:$0xff]   ;;  %s472_s22 = smov [#allocation7]  }
  0x28   :  { %351 = vmatprep.subr.bf16.mxu1 %v470_v0  ;;  %367 = vmatprep.mubr.msk.bf16.mxu1 %vm471_vm0, %v470_v0  ;;  %v387_v6 = vld [vmem:[#allocation5 + $0x8] sm:$0xff]   ;;  %v382_v7 = vld [vmem:[#allocation2 + $0x20] sm:$0xff]   ;;  %v388_v8 = vld [vmem:[#allocation5 + $0x10] sm:$0xff]   ;;  %s285_s23 = sshll.u32 %s472_s22, 4  ;;  %s286_s23 = int_to_ptr.vmem [resolvable:$true] %s285_s23 }
  0x29   :  { %332 = vmatpush3.bf16.msra.mxu0 %v378_v1  ;;  %352 = vmatpush3.bf16.msra.mxu1 %v386_v4  ;;  %v383_v9 = vld [vmem:[#allocation2 + $0x28] sm:$0xff]   ;;  %v389_v10 = vld [vmem:[#allocation5 + $0x18] sm:$0xff]   ;;  %v384_v11 = vld [vmem:[#allocation2 + $0x30] sm:$0xff]   ;;  %p443_p3 = scmp.lt.s32.totalorder %s286_s23, %s286_s23 }
  0x2a   :  { %333 = vmatprep.subr.bf16.mxu0 %v470_v0  ;;  %353 = vmatprep.subr.bf16.mxu1 %v470_v0  ;;  %v390_v12 = vld [vmem:[#allocation5 + $0x20] sm:$0xff]   ;;  %v385_v13 = vld [vmem:[#allocation2 + $0x38] sm:$0xff]   ;;  %v391_v15 = vld [vmem:[#allocation5 + $0x28] sm:$0xff]  }
  0x2b   :  { %v50_v14 = vld [vmem:[%s548_s0] sm:$0xff]  ;;  %v392_v17 = vld [vmem:[#allocation5 + $0x30] sm:$0xff]  }
  0x2c   :  { %v51_v16 = vpack.c.bf16 %v50_v14, %v50_v14  ;;  %v393_v18 = vld [vmem:[#allocation5 + $0x38] sm:$0xff]  }
  0x2d   :  { %334 = vmatpush3.bf16.msra.mxu0 %v379_v2  ;;  %354 = vmatpush3.bf16.msra.mxu1 %v387_v6  ;;  %v295_v19 = vld [vmem:[%s550_s2] ss:$0 sm:$0xff]  ;;  %s438_s2 = scalar_lea.vmem %s286_s23, 128 }
  0x2e   :  { %335 = vmatprep.subr.bf16.mxu0 %v470_v0  ;;  %355 = vmatprep.subr.bf16.mxu1 %v470_v0  ;;  %v304_v27 = vld [vmem:[%s552_s4] ss:$0 sm:$0xff]  ;;  %p439_p2 = scmp.ne.s32.totalorder %s286_s23, %s438_s2  ;;  %p444_p4 = scmp.lt.s32.totalorder %s438_s2, %s438_s2 }
  0x30   :  { %p445_p5 = por %p444_p4, %p443_p3 }
  0x31   :  { %336 = vmatpush3.bf16.msra.mxu0 %v380_v3  ;;  %356 = vmatpush3.bf16.msra.mxu1 %v388_v8 }
  0x32   :  { %337 = vmatprep.subr.bf16.mxu0 %v470_v0  ;;  %357 = vmatprep.subr.bf16.mxu1 %v470_v0  ;;  %p446_p6 = pnand %p445_p5, %p439_p2 }
  0x35   :  { %338 = vmatpush3.bf16.msra.mxu0 %v381_v5  ;;  %358 = vmatpush3.bf16.msra.mxu1 %v389_v10 }
  0x36   :  { %339 = vmatprep.subr.bf16.mxu0 %v470_v0  ;;  %359 = vmatprep.subr.bf16.mxu1 %v470_v0 }
  0x39   :  { %340 = vmatpush3.bf16.msra.mxu0 %v382_v7  ;;  %360 = vmatpush3.bf16.msra.mxu1 %v390_v12 }
  0x3a   :  { %341 = vmatprep.subr.bf16.mxu0 %v470_v0  ;;  %361 = vmatprep.subr.bf16.mxu1 %v470_v0 }
  0x3d   :  { %342 = vmatpush3.bf16.msra.mxu0 %v383_v9  ;;  %362 = vmatpush3.bf16.msra.mxu1 %v391_v15 }
  0x3e   :  { %343 = vmatprep.subr.bf16.mxu0 %v470_v0  ;;  %363 = vmatprep.subr.bf16.mxu1 %v470_v0 }
  0x41   :  { %344 = vmatpush3.bf16.msra.mxu0 %v384_v11  ;;  %364 = vmatpush3.bf16.msra.mxu1 %v392_v17 }
  0x42   :  { %345 = vmatprep.subr.bf16.mxu0 %v470_v0  ;;  %365 = vmatprep.subr.bf16.mxu1 %v470_v0 }
  0x45   :  { %346 = vmatpush3.bf16.msra.mxu0 %v385_v13  ;;  %366 = vmatpush3.bf16.msra.mxu1 %v393_v18 }
  0x48   :  { %348 = vmatmul.mubr.bf16.vlgmr.msra.gmra.mrb[0].mxu0 %v51_v16 }
 0x11b   :  { %v157_v20 = vpop.f32.mrb[0].mxu0 }
 0x11c   :  { %v158_v21 = vadd.f32 %v295_v19, %v157_v20  ;;  %v349_v22 = vpop.f32.mrb[1].mxu0 }
 0x11d   :  { %v160_v23 = vpop.f32.mrb[2].mxu0 }
 0x11e   :  { %v163_v24 = vmax.f32 %v158_v21, 0.0  ;;  %v350_v25 = vpop.f32.mrb[3].mxu0 }
 0x120   :  { %v164_v26 = vpack.c.bf16 %v163_v24, %v163_v24 }
 0x122   :  { %368 = vmatmul.mubr.bf16.vlgmr.msra.gmra.mrb[0].mxu1 %v164_v26 }
 0x1f5   :  { %v270_v28 = vpop.f32.mrb[0].mxu1 }
 0x1f6   :  { %v271_v29 = vadd.f32 %v304_v27, %v270_v28  ;;  %v369_v30 = vpop.f32.mrb[1].mxu1 }
 0x1f7   :  { %v273_v31 = vpop.f32.mrb[2].mxu1 }
 0x1f8   :  { %v276_v32 = vadd.f32 %v271_v29, %v50_v14  ;;  %v370_v33 = vpop.f32.mrb[3].mxu1 }
 0x1fa   :  { %v277_v34 = vmax.f32 %v276_v32, 0.0 }
 0x1fc   :  { %278 = vst [vmem:[#allocation7] sm:$0xff] %v277_v34 }
 0x1fd   :  { %449 = shalt.err (!%p446_p6)
}
 0x1fe   :  { %s450_s25 = scalar_lea.hbm %s553_s5, 128 }
 0x1ff   :  { %p451_p7 = scmp.ne.s32.totalorder %s553_s5, %s450_s25  ;;  %p454_p8 = scmp.lt.u32.totalorder %s450_s25, %s553_s5 }
 0x201   :  { %p456_p9 = pnand %p454_p8, %p451_p7 }
 0x203   :  { %459 = shalt.err (!%p456_p9)
}
 0x204   :  { %288 = dma.vmem_to_hbm [thread:$0]  %s286_s23, 128, %s553_s5, [#allocation4]  }
 0x205   :  { %464 = dma.done.wait [#allocation4], 128  }
 0x206   :  { %465 = vsyncadd [#allocation4], 4294967168 }
 0x207   :  { %292 = vsyncpa [#allocation3], 1 }
 0x208   :  { %293 = vsyncpa [#allocation6], 1 }
 0x209   :  { %294 = vsyncpa [#allocation4], 1 }

</bundles_post_ra>
